<compile_context>
chip_gen: v7x
topology: tpu7x:2x2x1
jax: 0.10.0
libtpu: 0.0.40
codegen_flags: <defaults>
</compile_context>

<pallas_src>
import functools

import jax
import jax.numpy as jnp
from jax.experimental import pallas as pl
from jax.experimental.pallas import tpu as pltpu


# ----------------------------- small helpers -----------------------------

@functools.lru_cache(maxsize=None)
def _vmem_limit_bytes():
    """Generation-aware scoped-VMEM limit (default scoped limit is far below physical)."""
    try:
        cap = int(pltpu.get_tpu_info().vmem_capacity_bytes)
    except Exception:
        cap = 64 * 1024 * 1024            # safe on every generation (v7x physical VMEM)
    return (cap * 3) // 4                 # leave headroom for Mosaic internal scratch


def _pick_tile(dim, target, align):
    """Largest `align`-multiple divisor of `dim` that is <= target, else the full extent."""
    if dim <= target:
        return dim
    t = (target // align) * align
    while t >= align:
        if dim % t == 0:
            return t
        t -= align
    return dim


# ----------------------------- Linear (VMEM-resident weight) -----------------------------

_RESIDENT_WEIGHT_BYTES = 24 * 1024 * 1024   # keep the bf16 weight panel resident below this


def _linear_resident_kernel(x_ref, w_ref, b_ref, o_ref, *, activation):
    """One (tm, N) output stripe; the whole (K, N) weight stays resident in VMEM."""
    y = jnp.dot(x_ref[...], w_ref[...], preferred_element_type=jnp.float32)
    y = y + b_ref[...]
    if activation == "gelu":
        # NOTE: tanh-approx GELU (HF/PyTorch BERT default is erf-GELU; tiny delta).
        y = jax.nn.gelu(y, approximate=True)
    o_ref[...] = y.astype(o_ref.dtype)


def _linear_tiled_kernel(x_ref, w_ref, b_ref, o_ref, acc_ref, *, activation):
    """K/N-tiled fallback for weights too large to keep VMEM-resident."""
    @pl.when(pl.program_id(2) == 0)
    def _():
        acc_ref[...] = jnp.zeros_like(acc_ref)

    acc_ref[...] += jnp.dot(x_ref[...], w_ref[...], preferred_element_type=jnp.float32)

    @pl.when(pl.program_id(2) == pl.num_programs(2) - 1)
    def _():
        y = acc_ref[...] + b_ref[...]
        if activation == "gelu":
            y = jax.nn.gelu(y, approximate=True)
        o_ref[...] = y.astype(o_ref.dtype)


def linear(x2d, w, b, activation=None, out_dtype=jnp.bfloat16, *, tm=512, tn=512, tk=512):
    """(M, K) @ (K, N) + b.  bf16 MXU inputs, f32 accumulation, bf16/f32 output."""
    M, K = x2d.shape
    K2, N = w.shape
    assert K == K2
    if x2d.dtype != jnp.bfloat16:
        x2d = x2d.astype(jnp.bfloat16)
    if w.dtype != jnp.bfloat16:
        w = w.astype(jnp.bfloat16)
    b2 = b.astype(jnp.float32).reshape(1, N)
    limit = _vmem_limit_bytes()
    tm = _pick_tile(M, tm, 8)

    if K * N * 2 <= min(_RESIDENT_WEIGHT_BYTES, limit // 3):
        return pl.pallas_call(
            functools.partial(_linear_resident_kernel, activation=activation),
            out_shape=jax.ShapeDtypeStruct((M, N), out_dtype),
            grid=(M // tm,),
            in_specs=[
                pl.BlockSpec((tm, K), lambda i: (i, 0)),
                pl.BlockSpec((K, N), lambda i: (0, 0)),   # weight resident: one DMA total
                pl.BlockSpec((1, N), lambda i: (0, 0)),
            ],
            out_specs=pl.BlockSpec((tm, N), lambda i: (i, 0)),
            compiler_params=pltpu.CompilerParams(
                dimension_semantics=("parallel",), vmem_limit_bytes=limit),
        )(x2d, w, b2)

    # Fallback: K/N-tiled matmul with f32 VMEM accumulator (prefer 256-multiples for the
    # 2x256^2 MXU on v6e/v7x).
    tn = _pick_tile(N, tn, 256) if N % 256 == 0 else _pick_tile(N, tn, 128)
    tk = _pick_tile(K, tk, 256) if K % 256 == 0 else _pick_tile(K, tk, 128)
    return pl.pallas_call(
        functools.partial(_linear_tiled_kernel, activation=activation),
        out_shape=jax.ShapeDtypeStruct((M, N), out_dtype),
        grid=(M // tm, N // tn, K // tk),
        in_specs=[
            pl.BlockSpec((tm, tk), lambda i, j, k: (i, k)),
            pl.BlockSpec((tk, tn), lambda i, j, k: (k, j)),
            pl.BlockSpec((1, tn), lambda i, j, k: (0, j)),
        ],
        out_specs=pl.BlockSpec((tm, tn), lambda i, j, k: (i, j)),
        scratch_shapes=[pltpu.VMEM((tm, tn), jnp.float32)],
        compiler_params=pltpu.CompilerParams(
            dimension_semantics=("parallel", "parallel", "arbitrary"),
            vmem_limit_bytes=limit),
    )(x2d, w, b2)


# ----------------------------- LayerNorm (+ fused residual) -----------------------------

def _layernorm_kernel(x_ref, g_ref, b_ref, o_ref, *, eps):
    x = x_ref[...].astype(jnp.float32)
    mu = jnp.mean(x, axis=-1, keepdims=True)
    var = jnp.mean((x - mu) ** 2, axis=-1, keepdims=True)
    y = (x - mu) * jax.lax.rsqrt(var + eps)
    o_ref[...] = (y * g_ref[...] + b_ref[...]).astype(o_ref.dtype)


def _residual_layernorm_kernel(x_ref, r_ref, g_ref, b_ref, o_ref, *, eps):
    x = x_ref[...].astype(jnp.float32) + r_ref[...].astype(jnp.float32)
    mu = jnp.mean(x, axis=-1, keepdims=True)
    var = jnp.mean((x - mu) ** 2, axis=-1, keepdims=True)
    y = (x - mu) * jax.lax.rsqrt(var + eps)
    o_ref[...] = (y * g_ref[...] + b_ref[...]).astype(o_ref.dtype)


def layernorm(x2d, gamma, beta, residual=None, eps=1e-12, out_dtype=jnp.bfloat16, *, tm=512):
    """Row-tiled LayerNorm; optionally fuses the residual add (x + residual) in-kernel."""
    M, H = x2d.shape
    tm = _pick_tile(M, tm, 8)
    limit = _vmem_limit_bytes()
    row_spec = pl.BlockSpec((tm, H), lambda i: (i, 0))
    vec_spec = pl.BlockSpec((1, H), lambda i: (0, 0))
    g2 = gamma.astype(jnp.float32).reshape(1, H)
    b2 = beta.astype(jnp.float32).reshape(1, H)
    cp = pltpu.CompilerParams(dimension_semantics=("parallel",), vmem_limit_bytes=limit)
    if residual is None:
        return pl.pallas_call(
            functools.partial(_layernorm_kernel, eps=eps),
            out_shape=jax.ShapeDtypeStruct((M, H), out_dtype),
            grid=(M // tm,),
            in_specs=[row_spec, vec_spec, vec_spec],
            out_specs=row_spec,
            compiler_params=cp,
        )(x2d, g2, b2)
    return pl.pallas_call(
        functools.partial(_residual_layernorm_kernel, eps=eps),
        out_shape=jax.ShapeDtypeStruct((M, H), out_dtype),
        grid=(M // tm,),
        in_specs=[row_spec, row_spec, vec_spec, vec_spec],
        out_specs=row_spec,
        compiler_params=cp,
    )(x2d, residual, g2, b2)


# ----------------------------- Attention (direct from the fused QKV activation) -----------------------------

def _mha_block(q, k, v, heads, out_dtype):
    """q/k/v: (S, heads*Dh) bf16 blocks (1/sqrt(Dh) already folded into the Q weights).
    Per-head attention via static 2-D slices (no 3-D transposes/reshapes in-kernel)."""
    S, GD = q.shape
    Dh = GD // heads
    outs = []
    for h in range(heads):
        qh = q[:, h * Dh:(h + 1) * Dh]
        kh = k[:, h * Dh:(h + 1) * Dh]
        vh = v[:, h * Dh:(h + 1) * Dh]
        # scores: contract on Dh without materializing a K transpose.
        s = jax.lax.dot_general(qh, kh, (((1,), (1,)), ((), ())),
                                preferred_element_type=jnp.float32)          # (S, S)
        m = jnp.max(s, axis=-1, keepdims=True)
        p = jnp.exp(s - m)
        l = jnp.sum(p, axis=-1, keepdims=True)
        ctx = jnp.dot(p.astype(vh.dtype), vh, preferred_element_type=jnp.float32)  # (S, Dh)
        outs.append(ctx * pl.reciprocal(l, approx=True))                     # EUP reciprocal
    return jnp.concatenate(outs, axis=-1).astype(out_dtype)


def _attn_grouped_kernel(q_ref, k_ref, v_ref, o_ref, *, heads):
    o_ref[...] = _mha_block(q_ref[...], k_ref[...], v_ref[...], heads, o_ref.dtype)


def _attn_allheads_kernel(qkv_ref, o_ref, *, hidden, heads):
    qkv = qkv_ref[...]
    o_ref[...] = _mha_block(qkv[:, :hidden], qkv[:, hidden:2 * hidden],
                            qkv[:, 2 * hidden:], heads, o_ref.dtype)


def _choose_head_group(nheads, dh, seq, vmem_limit):
    """Heads per block such that the (S, G*Dh) q/k/v/out blocks are lane-dense
    (G*Dh % 128 == 0) and the per-head (S, S) score intermediates fit a VMEM budget."""
    if seq % 8 != 0:
        return None
    legal = [g for g in range(1, nheads + 1)
             if nheads % g == 0 and (g * dh) % 128 == 0]
    if not legal:
        return None
    budget = vmem_limit // 2
    for g in sorted(legal, reverse=True):
        scores = 3 * g * seq * seq * 4            # s, p (f32) + bf16 copy, with headroom
        blocks = 2 * 4 * seq * g * dh * 2         # double-buffered q/k/v/out bf16 blocks
        if scores + blocks <= budget:
            return g
    return min(legal)                              # best effort; vmem limit is raised anyway


def attention(qkv, *, batch, seq, hidden, nheads, out_dtype=jnp.bfloat16):
    """Full (unmasked) softmax attention (the reference calls BertModel without a mask).

    qkv: (B*S, 3H) bf16 laid out [q | k | v] per row.  Three BlockSpecs index the q/k/v
    column panels of the SAME array, so no wrapper-side slices or head split/merge
    transposes ever touch HBM; the context is written straight into (B*S, H).
    TODO(synk): for long sequences (S >= ~2k) switch to a KV-tiled online-softmax (flash)
    variant so the per-head (S, S) score blocks stay bounded in VMEM.
    """
    dh = hidden // nheads
    limit = _vmem_limit_bytes()
    g = _choose_head_group(nheads, dh, seq, limit)

    if g is not None:
        gd = g * dh
        ng = nheads // g
        koff = hidden // gd                 # column-block offset of the K panel
        q_map = lambda b, h: (b, h)
        k_map = lambda b, h: (b, koff + h)
        v_map = lambda b, h: (b, 2 * koff + h)
        blk = (seq, gd)
        return pl.pallas_call(
            functools.partial(_attn_grouped_kernel, heads=g),
            out_shape=jax.ShapeDtypeStruct((batch * seq, hidden), out_dtype),
            grid=(batch, ng),
            in_specs=[pl.BlockSpec(blk, q_map),
                      pl.BlockSpec(blk, k_map),
                      pl.BlockSpec(blk, v_map)],
            out_specs=pl.BlockSpec(blk, q_map),
            compiler_params=pltpu.CompilerParams(
                dimension_semantics=("parallel", "parallel"), vmem_limit_bytes=limit),
        )(qkv, qkv, qkv)

    # Fallback for geometries where G*Dh cannot be made a multiple of 128 (tiny demo
    # hidden sizes): take the full (S, 3H) row block and slice q/k/v in-kernel.
    return pl.pallas_call(
        functools.partial(_attn_allheads_kernel, hidden=hidden, heads=nheads),
        out_shape=jax.ShapeDtypeStruct((batch * seq, hidden), out_dtype),
        grid=(batch,),
        in_specs=[pl.BlockSpec((seq, 3 * hidden), lambda b: (b, 0))],
        out_specs=pl.BlockSpec((seq, hidden), lambda b: (b, 0)),
        compiler_params=pltpu.CompilerParams(
            dimension_semantics=("parallel",), vmem_limit_bytes=limit),
    )(qkv)


# ----------------------------- CrossEntropy (ignore_index=-1) -----------------------------

def _ce_kernel(logits_ref, labels_ref, o_ref, acc_ref, *, num_classes):
    step = pl.program_id(0)

    @pl.when(step == 0)
    def _():
        acc_ref[0] = jnp.float32(0.0)     # running loss sum
        acc_ref[1] = jnp.float32(0.0)     # running valid-token count

    logits = logits_ref[...].astype(jnp.float32)        # (tm, C_pad) lane-dense block
    labels = labels_ref[...]                            # (tm, 1) int32
    tm, cp = logits.shape
    cls = jax.lax.broadcasted_iota(jnp.int32, (tm, cp), 1)
    logits = jnp.where(cls < num_classes, logits, jnp.float32(-1e30))   # mask pad lanes
    m = jnp.max(logits, axis=-1, keepdims=True)
    lse = m + jnp.log(jnp.sum(jnp.exp(logits - m), axis=-1, keepdims=True))
    onehot = (cls == labels).astype(jnp.float32)
    picked = jnp.sum(logits * onehot, axis=-1, keepdims=True)
    valid = (labels >= 0).astype(jnp.float32)
    acc_ref[0] += jnp.sum((lse - picked) * valid)
    acc_ref[1] += jnp.sum(valid)

    @pl.when(step == pl.num_programs(0) - 1)
    def _():
        o_ref[0, 0] = acc_ref[0] / jnp.maximum(acc_ref[1], 1.0)


def cross_entropy_ignore_neg1(logits_pad, labels1d, num_classes, *, tm=512):
    """PyTorch nn.CrossEntropyLoss(ignore_index=-1) semantics (mean over valid tokens).
    logits_pad: (N, C_pad) with zero-padded lanes beyond num_classes (masked in-kernel)."""
    N, Cp = logits_pad.shape
    tm = _pick_tile(N, tm, 8)
    labels2d = labels1d.reshape(N, 1).astype(jnp.int32)
    out = pl.pallas_call(
        functools.partial(_ce_kernel, num_classes=num_classes),
        out_shape=jax.ShapeDtypeStruct((1, 1), jnp.float32),
        grid=(N // tm,),
        in_specs=[
            pl.BlockSpec((tm, Cp), lambda i: (i, 0)),
            pl.BlockSpec((tm, 1), lambda i: (i, 0)),
        ],
        out_specs=pl.BlockSpec((1, 1), lambda i: (0, 0)),
        scratch_shapes=[pltpu.SMEM((2,), jnp.float32)],
        compiler_params=pltpu.CompilerParams(
            dimension_semantics=("arbitrary",), vmem_limit_bytes=_vmem_limit_bytes()),
    )(logits_pad, labels2d)
    return out[0, 0]


# ----------------------------- Parameters -----------------------------

def init_params(key, *, vocab_size, hidden_size, num_layers, num_heads,
                class_num, max_pos, intermediate_mult=4):
    V = vocab_size + 1                  # matches `self.vocab_size = config['vocab_size'] + 1`
    H = hidden_size
    I = intermediate_mult * H
    Dh = H // num_heads
    C_pad = ((class_num + 127) // 128) * 128     # lane-dense classifier output width
    qscale = 1.0 / float(Dh) ** 0.5

    def nrm(k, shape, scale=0.02):
        return scale * jax.random.normal(k, shape, jnp.float32)

    keys = jax.random.split(key, 6 + 4 * num_layers)
    it = iter(range(len(keys)))

    fc_w = jnp.zeros((H, C_pad), jnp.float32)
    fc_w = fc_w.at[:, :class_num].set(nrm(keys[next(it)], (H, class_num)))

    p = {
        "word_emb": nrm(keys[next(it)], (V, H)),
        "pos_emb": nrm(keys[next(it)], (max_pos, H)),
        "type_emb": nrm(keys[next(it)], (2, H)),
        "emb_ln_g": jnp.ones((H,), jnp.float32),
        "emb_ln_b": jnp.zeros((H,), jnp.float32),
        "fc_w": fc_w.astype(jnp.bfloat16),            # (H, C_pad) bf16, zero-padded lanes
        "fc_b": jnp.zeros((C_pad,), jnp.float32),
        "layers": [],
    }
    for _ in range(num_layers):
        wqkv = nrm(keys[next(it)], (H, 3 * H))
        wqkv = wqkv.at[:, :H].multiply(qscale)        # fold 1/sqrt(Dh) into the Q columns
        bqkv = jnp.zeros((3 * H,), jnp.float32)
        bqkv = bqkv.at[:H].multiply(qscale)
        lp = {
            "wqkv": wqkv.astype(jnp.bfloat16),        # fused QKV: one (H, 3H) matmul/layer
            "bqkv": bqkv,
            "wo": nrm(keys[next(it)], (H, H)).astype(jnp.bfloat16),
            "bo": jnp.zeros((H,), jnp.float32),
            "ln1_g": jnp.ones((H,), jnp.float32), "ln1_b": jnp.zeros((H,), jnp.float32),
            "w1": nrm(keys[next(it)], (H, I)).astype(jnp.bfloat16),
            "b1": jnp.zeros((I,), jnp.float32),
            "w2": nrm(keys[next(it)], (I, H)).astype(jnp.bfloat16),
            "b2": jnp.zeros((H,), jnp.float32),
            "ln2_g": jnp.ones((H,), jnp.float32), "ln2_b": jnp.zeros((H,), jnp.float32),
        }
        p["layers"].append(lp)
    return p


# ----------------------------- Forward (Pallas) -----------------------------

def bert_encoder(params, token_ids, num_heads):
    B, S = token_ids.shape
    H = params["word_emb"].shape[1]

    # Embedding gathers are plain-JAX glue; everything downstream runs in Pallas kernels.
    emb = (params["word_emb"][token_ids]
           + params["pos_emb"][jnp.arange(S)][None, :, :]
           + params["type_emb"][0][None, None, :])
    h = layernorm(emb.reshape(B * S, H), params["emb_ln_g"], params["emb_ln_b"])   # bf16

    for lp in params["layers"]:
        qkv = linear(h, lp["wqkv"], lp["bqkv"])                          # (B*S, 3H) bf16
        ctx = attention(qkv, batch=B, seq=S, hidden=H, nheads=num_heads)  # (B*S, H) bf16
        attn_out = linear(ctx, lp["wo"], lp["bo"])
        h = layernorm(attn_out, lp["ln1_g"], lp["ln1_b"], residual=h)    # fused residual+LN
        ff = linear(h, lp["w1"], lp["b1"], activation="gelu")
        ff = linear(ff, lp["w2"], lp["b2"])
        h = layernorm(ff, lp["ln2_g"], lp["ln2_b"], residual=h)          # fused residual+LN
    return h    # (B*S, H) sequence output (pooled output is discarded by NerModel)


def ner_forward(params, x, y=None, *, num_heads, class_num, use_crf=False):
    B, S = x.shape
    seq = bert_encoder(params, x, num_heads)                                 # (B*S, H) bf16
    logits_pad = linear(seq, params["fc_w"], params["fc_b"], out_dtype=jnp.float32)
    if y is not None:
        if use_crf:
            raise NotImplementedError   # TODO(synk): CRF log-likelihood not implemented
        return cross_entropy_ignore_neg1(logits_pad, y.reshape(-1), class_num)
    if use_crf:
        raise NotImplementedError       # TODO(synk): viterbi_decode not implemented
    return logits_pad[:, :class_num].reshape(B, S, class_num)               # y_pred


# ----------------------------- Pure-JAX reference (self-test only) -----------------------------

def ref_forward(params, x, y=None, *, num_heads, class_num):
    B, S = x.shape
    H = params["word_emb"].shape[1]
    Dh = H // num_heads

    def ln(v, g, b, eps=1e-12):
        mu = v.mean(-1, keepdims=True)
        var = ((v - mu) ** 2).mean(-1, keepdims=True)
        return (v - mu) / jnp.sqrt(var + eps) * g + b

    emb = (params["word_emb"][x]
           + params["pos_emb"][jnp.arange(S)][None, :, :]
           + params["type_emb"][0][None, None, :])
    h = ln(emb, params["emb_ln_g"], params["emb_ln_b"])
    for lp in params["layers"]:
        qkv = h @ lp["wqkv"].astype(jnp.float32) + lp["bqkv"]
        q, k, v = qkv[..., :H], qkv[..., H:2 * H], qkv[..., 2 * H:]

        def split(t):
            return t.reshape(B, S, num_heads, Dh).transpose(0, 2, 1, 3)

        q, k, v = split(q), split(k), split(v)
        s = q @ k.transpose(0, 1, 3, 2)            # 1/sqrt(Dh) already folded into wqkv
        p = jax.nn.softmax(s, axis=-1)
        ctx = (p @ v).transpose(0, 2, 1, 3).reshape(B, S, H)
        h = ln(h + ctx @ lp["wo"].astype(jnp.float32) + lp["bo"], lp["ln1_g"], lp["ln1_b"])
        ff = jax.nn.gelu(h @ lp["w1"].astype(jnp.float32) + lp["b1"], approximate=True)
        ff = ff @ lp["w2"].astype(jnp.float32) + lp["b2"]
        h = ln(h + ff, lp["ln2_g"], lp["ln2_b"])
    logits = (h @ params["fc_w"].astype(jnp.float32) + params["fc_b"])[..., :class_num]
    if y is None:
        return logits
    flat = logits.reshape(-1, class_num)
    labels = y.reshape(-1)
    valid = (labels >= 0).astype(jnp.float32)
    lse = jax.nn.logsumexp(flat, axis=-1)
    picked = jnp.take_along_axis(flat, jnp.maximum(labels, 0)[:, None], axis=1)[:, 0]
    return jnp.sum((lse - picked) * valid) / jnp.maximum(jnp.sum(valid), 1.0)


# ----------------------------- Demo / self-test -----------------------------

if __name__ == "__main__":
    key = jax.random.PRNGKey(0)
    kp, kx, ky, kp2, kx2 = jax.random.split(key, 5)

    # Config 1: tiny BERT -> exercises the all-heads-per-batch attention fallback + CE loss.
    cfg = dict(vocab_size=30, hidden_size=32, num_layers=2, class_num=9,
               num_heads=2, max_position=8, use_crf=False)
    B, S = 2, 8
    params = init_params(kp, vocab_size=cfg["vocab_size"], hidden_size=cfg["hidden_size"],
                         num_layers=cfg["num_layers"], num_heads=cfg["num_heads"],
                         class_num=cfg["class_num"], max_pos=cfg["max_position"])
    x = jax.random.randint(kx, (B, S), 0, cfg["vocab_size"] + 1, dtype=jnp.int32)
    y = jax.random.randint(ky, (B, S), -1, cfg["class_num"], dtype=jnp.int32)

    # Inference path: forward(x) -> y_pred logits (B, S, class_num)
    y_pred = ner_forward(params, x, num_heads=cfg["num_heads"],
                         class_num=cfg["class_num"], use_crf=cfg["use_crf"])
    jax.block_until_ready(y_pred)
    assert y_pred.shape == (B, S, cfg["class_num"])
    assert bool(jnp.all(jnp.isfinite(y_pred)))
    ref_logits = ref_forward(params, x, num_heads=cfg["num_heads"], class_num=cfg["class_num"])
    assert float(jnp.max(jnp.abs(y_pred - ref_logits))) < 5e-2

    # Training path (use_crf=False): forward(x, y) -> mean CE loss ignoring label -1
    loss = ner_forward(params, x, y, num_heads=cfg["num_heads"],
                       class_num=cfg["class_num"], use_crf=cfg["use_crf"])
    jax.block_until_ready(loss)
    assert loss.shape == () and bool(jnp.isfinite(loss))
    ref_loss = ref_forward(params, x, y, num_heads=cfg["num_heads"], class_num=cfg["class_num"])
    assert abs(float(loss) - float(ref_loss)) < 2e-2

    # Config 2: Dh=128 -> exercises the lane-dense head-grouped attention path that reads
    # q/k/v straight out of the fused QKV activation via BlockSpec column indexing.
    cfg2 = dict(vocab_size=30, hidden_size=256, num_layers=1, class_num=5,
                num_heads=2, max_position=8)
    params2 = init_params(kp2, vocab_size=cfg2["vocab_size"], hidden_size=cfg2["hidden_size"],
                          num_layers=cfg2["num_layers"], num_heads=cfg2["num_heads"],
                          class_num=cfg2["class_num"], max_pos=cfg2["max_position"])
    x2 = jax.random.randint(kx2, (B, S), 0, cfg2["vocab_size"] + 1, dtype=jnp.int32)
    y_pred2 = ner_forward(params2, x2, num_heads=cfg2["num_heads"], class_num=cfg2["class_num"])
    jax.block_until_ready(y_pred2)
    ref2 = ref_forward(params2, x2, num_heads=cfg2["num_heads"], class_num=cfg2["class_num"])
    assert float(jnp.max(jnp.abs(y_pred2 - ref2))) < 5e-2

    print("KERNEL_OK")
</pallas_src>

<mosaic_0001>
module attributes {stable_mosaic.version = 11 : i64} {
  func.func @_layernorm_kernel(%arg0: i32, %arg1: memref<16x32xf32, #tpu.memory_space<vmem>>, %arg2: memref<1x32xf32, #tpu.memory_space<vmem>>, %arg3: memref<1x32xf32, #tpu.memory_space<vmem>>, %arg4: memref<16x32xbf16, #tpu.memory_space<vmem>>) attributes {dimension_semantics = [#tpu.dimension_semantics<parallel>], iteration_bounds = array<i64: 1>, scalar_prefetch = 0 : i64, scratch_operands = 0 : i64, tpu.core_type = #tpu.core_type<tc>, window_params = [{transform_indices = @transform_0, window_bounds = array<i64: 16, 32>}, {pipeline_mode = #tpu.pipeline_mode<synchronous>, transform_indices = @transform_1, window_bounds = array<i64: 1, 32>}, {pipeline_mode = #tpu.pipeline_mode<synchronous>, transform_indices = @transform_2, window_bounds = array<i64: 1, 32>}, {transform_indices = @transform_3, window_bounds = array<i64: 16, 32>}]} {
    %c0 = arith.constant 0 : index
    %c0_0 = arith.constant 0 : index
    %0 = vector.load %arg1[%c0, %c0_0] : memref<16x32xf32, #tpu.memory_space<vmem>>, vector<16x32xf32>
    %cst = arith.constant dense<0.000000e+00> : vector<16xf32>
    %1 = vector.multi_reduction <add>, %0, %cst [1] : vector<16x32xf32> to vector<16xf32>
    %2 = vector.shape_cast %1 : vector<16xf32> to vector<16x1xf32>
    %cst_1 = arith.constant 3.200000e+01 : f32
    %3 = vector.broadcast %cst_1 : f32 to vector<16x1xf32>
    %4 = arith.divf %2, %3 : vector<16x1xf32>
    %5 = vector.broadcast %4 : vector<16x1xf32> to vector<16x32xf32>
    %6 = arith.subf %0, %5 : vector<16x32xf32>
    %7 = arith.mulf %6, %6 : vector<16x32xf32>
    %cst_2 = arith.constant dense<0.000000e+00> : vector<16xf32>
    %8 = vector.multi_reduction <add>, %7, %cst_2 [1] : vector<16x32xf32> to vector<16xf32>
    %9 = vector.shape_cast %8 : vector<16xf32> to vector<16x1xf32>
    %cst_3 = arith.constant 3.200000e+01 : f32
    %10 = vector.broadcast %cst_3 : f32 to vector<16x1xf32>
    %11 = arith.divf %9, %10 : vector<16x1xf32>
    %12 = vector.broadcast %4 : vector<16x1xf32> to vector<16x32xf32>
    %13 = arith.subf %0, %12 : vector<16x32xf32>
    %cst_4 = arith.constant 9.99999996E-13 : f32
    %14 = vector.broadcast %cst_4 : f32 to vector<16x1xf32>
    %15 = arith.addf %11, %14 : vector<16x1xf32>
    %16 = math.rsqrt %15 : vector<16x1xf32>
    %17 = vector.broadcast %16 : vector<16x1xf32> to vector<16x32xf32>
    %18 = arith.mulf %13, %17 : vector<16x32xf32>
    %c0_5 = arith.constant 0 : index
    %c0_6 = arith.constant 0 : index
    %19 = vector.load %arg2[%c0_5, %c0_6] : memref<1x32xf32, #tpu.memory_space<vmem>>, vector<1x32xf32>
    %20 = vector.broadcast %19 : vector<1x32xf32> to vector<16x32xf32>
    %21 = arith.mulf %18, %20 : vector<16x32xf32>
    %c0_7 = arith.constant 0 : index
    %c0_8 = arith.constant 0 : index
    %22 = vector.load %arg3[%c0_7, %c0_8] : memref<1x32xf32, #tpu.memory_space<vmem>>, vector<1x32xf32>
    %23 = vector.broadcast %22 : vector<1x32xf32> to vector<16x32xf32>
    %24 = arith.addf %21, %23 : vector<16x32xf32>
    %25 = arith.truncf %24 : vector<16x32xf32> to vector<16x32xbf16>
    %c0_9 = arith.constant 0 : index
    %c0_10 = arith.constant 0 : index
    %26 = vector.load %arg4[%c0_9, %c0_10] : memref<16x32xbf16, #tpu.memory_space<vmem>>, vector<16x32xbf16>
    tpu.vector_store %arg4[%c0_9, %c0_10], %25 {strides = array<i32>} : memref<16x32xbf16, #tpu.memory_space<vmem>>, vector<16x32xbf16>,
    return
  }
  func.func @transform_0(%arg0: i32) -> (i32, i32) {
    %c0_i32 = arith.constant 0 : i32
    %c0_i32_0 = arith.constant 0 : i32
    return %arg0, %c0_i32 : i32, i32
  }
  func.func @transform_1(%arg0: i32) -> (i32, i32) {
    %c0_i32 = arith.constant 0 : i32
    %c0_i32_0 = arith.constant 0 : i32
    %c0_i32_1 = arith.constant 0 : i32
    return %c0_i32, %c0_i32_0 : i32, i32
  }
  func.func @transform_2(%arg0: i32) -> (i32, i32) {
    %c0_i32 = arith.constant 0 : i32
    %c0_i32_0 = arith.constant 0 : i32
    %c0_i32_1 = arith.constant 0 : i32
    return %c0_i32, %c0_i32_0 : i32, i32
  }
  func.func @transform_3(%arg0: i32) -> (i32, i32) {
    %c0_i32 = arith.constant 0 : i32
    %c0_i32_0 = arith.constant 0 : i32
    return %arg0, %c0_i32 : i32, i32
  }
}

</mosaic_0001>

<bundles_post_ra>
// kernel: tpu_custom_call.1
= control target key start
LH: loop header
LB: loop body
LE: loop exit
PB: predicated region body
PF: predicated region fallthrough
CT: control target
= control target key end

     0   :  { %8 = vsyncpa [#allocation3], 0  ;;  %s229_s0 = inlined_call_operand.hbm [shape: f32[16,32], index: 0, kind: input, shape index: {}]   ;;  %s230_s1 = inlined_call_operand.vmem [shape: f32[1,32], index: 1, kind: input, shape index: {}]   ;;  %s231_s2 = inlined_call_operand.vmem [shape: f32[1,32], index: 2, kind: input, shape index: {}]   ;;  %s232_s3 = inlined_call_operand.hbm [shape: bf16[16,32], index: 3, kind: output, shape index: {}]  }
   0x1   :  { %9 = vsyncpa [#allocation4], 0  ;;  %s169_s12 = smov [#allocation2]   ;;  %s121_s16 = scalar_lea.hbm %s229_s0, 256 }
   0x2   :  { %s15_s13 = sshll.u32 %s169_s12, 4  ;;  %p122_p0 = scmp.ne.s32.totalorder %s229_s0, %s121_s16  ;;  %s16_s13 = int_to_ptr.vmem [resolvable:$true] %s15_s13 }
   0x3   :  { %p125_p1 = scmp.lt.u32.totalorder %s121_s16, %s229_s0 }
   0x5   :  { %p127_p2 = pnand %p125_p1, %p122_p0 }
   0x7   :  { %130 = shalt.err (!%p127_p2)
}
   0x8   :  { %s131_s21 = scalar_lea.vmem %s16_s13, 256  ;;  %p136_p4 = scmp.lt.s32.totalorder %s16_s13, %s16_s13 }
   0x9   :  { %p132_p3 = scmp.ne.s32.totalorder %s16_s13, %s131_s21  ;;  %p137_p5 = scmp.lt.s32.totalorder %s131_s21, %s131_s21 }
   0xb   :  { %p138_p6 = por %p137_p5, %p136_p4 }
   0xd   :  { %p139_p7 = pnand %p138_p6, %p132_p3 }
   0xf   :  { %142 = shalt.err (!%p139_p7)
}
  0x10   :  { %s170_s22 = smov 128   ;;  %s171_s23 = smov 8  }
  0x11   :  { %21 = dma.hbm_to_vmem [thread:$0]  %s229_s0, 256, %s16_s13, [#allocation3], %s170_s22, %s170_s22, %s171_s23  }
  0x12   :  { %165 = dma.done.wait [#allocation3], 256  }
  0x13   :  { %166 = vsyncadd [#allocation3], 4294967040  ;;  %vm31_vm0 = vcmask 261120   ;;  %v29_v0 = vld [vmem:[#allocation2] sm:$0xff]  ;;  %v30_v1 = vld [vmem:[#allocation2 + $0x8] sm:$0xff]  ;;  %vm85_vm1 = vcmask 257024  }
  0x14   :  { %v32_v2 = vsel %vm31_vm0, %v29_v0, 0.0  ;;  %v35_v3 = vsel %vm31_vm0, %v30_v1, 0.0  ;;  %v105_v21 = vld [vmem:[%s230_s1] ss:$0 sm:$0xff]  ;;  %s172_s29 = smov [#allocation5]  }
  0x15   :  { %33 = vadd.xlane.f32.xlu0 %v32_v2  ;;  %v106_v23 = vld [vmem:[%s231_s2] ss:$0 sm:$0xff]  ;;  %s93_s30 = sshll.u32 %s172_s29, 4  ;;  %s94_s30 = int_to_ptr.vmem [resolvable:$true] %s93_s30 }
  0x16   :  { %s143_s1 = scalar_lea.vmem %s94_s30, 128  ;;  %p148_p9 = scmp.lt.s32.totalorder %s94_s30, %s94_s30 }
  0x17   :  { %p144_p8 = scmp.ne.s32.totalorder %s94_s30, %s143_s1  ;;  %p149_p10 = scmp.lt.s32.totalorder %s143_s1, %s143_s1 }
  0x19   :  { %36 = vadd.xlane.f32.xlu0 %v35_v3  ;;  %p150_p11 = por %p149_p10, %p148_p9 }
  0x1b   :  { %p151_p12 = pnand %p150_p11, %p144_p8 }
  0xa2   :  { %v34_v4 = vpop.xlane.xlu0 %33 }
  0xa3   :  { %v39_v5 = vmul.f32 0.03125, %v34_v4 }
  0xa5   :  { %v41_v6 = vsub.f32 %v29_v0, %v39_v5 }
  0xa6   :  { %v37_v7 = vpop.xlane.xlu0 %36 }
  0xa7   :  { %v40_v8 = vmul.f32 0.03125, %v37_v7  ;;  %v43_v9 = vmul.f32 %v41_v6, %v41_v6 }
  0xa9   :  { %v42_v10 = vsub.f32 %v30_v1, %v40_v8  ;;  %v45_v11 = vsel %vm31_vm0, %v43_v9, 0.0 }
  0xaa   :  { %46 = vadd.xlane.f32.xlu1 %v45_v11 }
  0xab   :  { %v44_v12 = vmul.f32 %v42_v10, %v42_v10 }
  0xad   :  { %v48_v13 = vsel %vm31_vm0, %v44_v12, 0.0 }
  0xae   :  { %49 = vadd.xlane.f32.xlu1 %v48_v13 }
 0x137   :  { %v47_v14 = vpop.xlane.xlu1 %46 }
 0x138   :  { %v51_v15 = vmul.f32 0.03125, %v47_v14 }
 0x13a   :  { %v53_v16 = vadd.f32 1e-12, %v51_v15 }
 0x13b   :  { %v50_v17 = vpop.xlane.xlu1 %49 }
 0x13c   :  { %117 = vrsqrt.f32 %v53_v16  ;;  %v52_v18 = vmul.f32 0.03125, %v50_v17 }
 0x13e   :  { %v54_v19 = vadd.f32 1e-12, %v52_v18 }
 0x140   :  { %119 = vrsqrt.f32 %v54_v19 }
 0x146   :  { %v118_v20 = vpop.eup %117 }
 0x147   :  { %v57_v22 = vmul.f32 %v118_v20, %v41_v6 }
 0x149   :  { %v66_v24 = vmul.f32 %v105_v21, %v57_v22 }
 0x14a   :  { %v120_v25 = vpop.eup %119 }
 0x14b   :  { %v58_v26 = vmul.f32 %v120_v25, %v42_v10  ;;  %v75_v27 = vadd.f32 %v106_v23, %v66_v24 }
 0x14d   :  { %v67_v28 = vmul.f32 %v105_v21, %v58_v26  ;;  %v109_v29 = vpack.c.bf16 %v75_v27, %v75_v27 }
 0x14f   :  { %v76_v30 = vadd.f32 %v106_v23, %v67_v28  ;;  %86 = vst.msk [vmem:[#allocation5] sm:$0xf] %vm85_vm1, %v109_v29 }
 0x151   :  { %v110_v31 = vpack.c.bf16 %v76_v30, %v76_v30 }
 0x153   :  { %87 = vst.msk [vmem:[#allocation5 + $0x4] sm:$0xf] %vm85_vm1, %v110_v31 }
 0x154   :  { %154 = shalt.err (!%p151_p12)
}
 0x155   :  { %s155_s5 = scalar_lea.hbm %s232_s3, 128 }
 0x156   :  { %p156_p13 = scmp.ne.s32.totalorder %s232_s3, %s155_s5  ;;  %p159_p0 = scmp.lt.u32.totalorder %s155_s5, %s232_s3 }
 0x158   :  { %p161_p1 = pnand %p159_p0, %p156_p13 }
 0x15a   :  { %164 = shalt.err (!%p161_p1)
}
 0x15b   :  { %s173_s10 = smov 64   ;;  %s174_s11 = smov 4  }
 0x15c   :  { %99 = dma.vmem_to_hbm [thread:$0]  %s94_s30, 128, %s232_s3, [#allocation4], %s173_s10, %s173_s10, %s174_s11  }
 0x15d   :  { %167 = dma.done.wait [#allocation4], 128  }
 0x15e   :  { %168 = vsyncadd [#allocation4], 4294967168 }
 0x15f   :  { %103 = vsyncpa [#allocation3], 1 }
 0x160   :  { %104 = vsyncpa [#allocation4], 1 }

</bundles_post_ra>
